<compile_context>
chip_gen: v6e
topology: v6e:2x2x1
jax: 0.10.0
libtpu: 0.0.40
codegen_flags: <defaults>
</compile_context>

<pallas_src>
import functools

import jax
import jax.numpy as jnp
import numpy as np
from jax.experimental import pallas as pl
from jax.experimental.pallas import tpu as pltpu


def _round_up(x, m):
    return ((x + m - 1) // m) * m


def _cdiv(a, b):
    return (a + b - 1) // b


def resblock_kernel(patch_ref, w1_ref, b1_ref, w2_ref, ws_ref, bout_ref,
                    out_ref, *, c0):
    patches = patch_ref[...]                                    # (tm, 9*C0) bf16
    # conv1 (3x3, stride 2, pad 1) as GEMM over im2col patches; BN1 folded; ReLU.
    y1 = jnp.dot(patches, w1_ref[...], preferred_element_type=jnp.float32)
    y1 = jnp.maximum(y1 + b1_ref[...], 0.0)                     # (tm, C1p) f32
    # conv2 (1x1) as GEMM; BN2 folded (its bias lives in bout_ref).
    blk = jnp.dot(y1.astype(jnp.bfloat16), w2_ref[...],
                  preferred_element_type=jnp.float32)           # (tm, C2p) f32
    # shortcut conv (1x1, stride 2): the stride-2 input is exactly the center
    # im2col tap, which sits at lane offset 0 of the patch matrix.
    sc = jnp.dot(patches[:, :c0], ws_ref[...],
                 preferred_element_type=jnp.float32)            # (tm, C2p) f32
    out_ref[...] = jnp.maximum(blk + sc + bout_ref[...], 0.0).astype(out_ref.dtype)


def _fold_bn(gamma, beta, mean, var, eps=1e-5):
    scale = gamma / jnp.sqrt(var + eps)
    shift = beta - mean * scale
    return scale, shift


@functools.partial(jax.jit, static_argnames=("tm",))
def resblock_forward(x_nchw, params, tm=512):
    N, C0, H, W = x_nchw.shape
    C1 = params["w1"].shape[0]
    C2 = params["w2"].shape[0]
    Ho = (H - 1) // 2 + 1
    Wo = (W - 1) // 2 + 1

    # NHWC, bf16 up front (halves the im2col glue / patch-matrix HBM traffic).
    x = jnp.transpose(x_nchw, (0, 2, 3, 1)).astype(jnp.bfloat16)

    # --- im2col for the 3x3 stride-2 pad-1 conv (wrapper glue) ---
    # Tap order puts the CENTER tap (kh=1, kw=1) first so the 1x1 stride-2
    # shortcut can reuse patches[:, :C0] inside the kernel.
    xp = jnp.pad(x, ((0, 0), (1, 1), (1, 1), (0, 0)))
    tap_order = [(1, 1)] + [(kh, kw) for kh in range(3) for kw in range(3)
                            if (kh, kw) != (1, 1)]
    taps = [xp[:, kh::2, kw::2, :][:, :Ho, :Wo, :] for kh, kw in tap_order]
    patches = jnp.concatenate(taps, axis=-1).reshape(N * Ho * Wo, 9 * C0)

    # --- fold BN (+ conv biases) into GEMM weights / per-channel biases (fp32) ---
    s1, sh1 = _fold_bn(*params["bn1"])
    s2, sh2 = _fold_bn(*params["bn2"])
    ss, shs = _fold_bn(*params["bns"])

    # pad channel dims to lane multiples (128): lane-dense stores + non-ragged MXU passes
    C1p = _round_up(C1, 128)
    C2p = _round_up(C2, 128)

    # conv1 weight (C1, C0, 3, 3) -> rows in the SAME tap order -> (9*C0, C1)
    w1_khwc = jnp.transpose(params["w1"], (2, 3, 1, 0))                 # (3,3,C0,C1)
    w1_rows = jnp.concatenate([w1_khwc[kh, kw] for kh, kw in tap_order], axis=0)
    w1_eff = w1_rows * s1[None, :]
    b1_eff = s1 * params["b1"] + sh1

    w2_eff = params["w2"][:, :, 0, 0].T * s2[None, :]                   # (C1, C2)
    ws_eff = params["ws"][:, :, 0, 0].T * ss[None, :]                   # (C0, C2)
    # single combined bias for the final sum (BN2 + BN_shortcut, incl. conv biases)
    b_out = (s2 * params["b2"] + sh2) + (ss * params["bs"] + shs)

    w1_eff = jnp.pad(w1_eff, ((0, 0), (0, C1p - C1)))
    b1_eff = jnp.pad(b1_eff, (0, C1p - C1)).reshape(1, C1p)
    w2_eff = jnp.pad(w2_eff, ((0, C1p - C1), (0, C2p - C2)))
    ws_eff = jnp.pad(ws_eff, ((0, 0), (0, C2p - C2)))
    b_out = jnp.pad(b_out, (0, C2p - C2)).reshape(1, C2p)

    # GEMM operands in bf16 (fold done above in fp32); biases / epilogue stay fp32.
    w1_eff = w1_eff.astype(jnp.bfloat16)
    w2_eff = w2_eff.astype(jnp.bfloat16)
    ws_eff = ws_eff.astype(jnp.bfloat16)

    # --- tile the flattened (N*Ho*Wo) dimension ---
    M = N * Ho * Wo
    tm_eff = min(tm, _round_up(M, 16))          # bf16 sublane packing: multiple of 16
    if _cdiv(M, tm_eff) == 1 and M >= 512:
        # split so both TensorCores on v7x (2 TCs/chip) get work
        tm_eff = _round_up(_cdiv(M, 2), 16)
    Mp = _round_up(M, tm_eff)
    patches = jnp.pad(patches, ((0, Mp - M), (0, 0)))

    out_flat = pl.pallas_call(
        functools.partial(resblock_kernel, c0=C0),
        out_shape=jax.ShapeDtypeStruct((Mp, C2p), jnp.float32),
        grid=(Mp // tm_eff,),
        in_specs=[
            pl.BlockSpec((tm_eff, 9 * C0), lambda i: (i, 0)),
            pl.BlockSpec((9 * C0, C1p), lambda i: (0, 0)),
            pl.BlockSpec((1, C1p), lambda i: (0, 0)),
            pl.BlockSpec((C1p, C2p), lambda i: (0, 0)),
            pl.BlockSpec((C0, C2p), lambda i: (0, 0)),
            pl.BlockSpec((1, C2p), lambda i: (0, 0)),
        ],
        out_specs=pl.BlockSpec((tm_eff, C2p), lambda i: (i, 0)),
        compiler_params=pltpu.CompilerParams(
            dimension_semantics=("parallel",),
            vmem_limit_bytes=32 * 1024 * 1024),
    )(patches, w1_eff, b1_eff, w2_eff, ws_eff, b_out)

    out = out_flat[:M, :C2].reshape(N, Ho, Wo, C2)
    return jnp.transpose(out, (0, 3, 1, 2))  # back to NCHW


# ---------------- pure-JAX reference (for correctness check) ----------------
def ref_forward(x, p, eps=1e-5):
    def conv(x, w, b, stride, pad):
        y = jax.lax.conv_general_dilated(
            x, w, (stride, stride), [(pad, pad), (pad, pad)],
            dimension_numbers=("NCHW", "OIHW", "NCHW"))
        return y + b[None, :, None, None]

    def bn(x, g, be, m, v):
        return (g[None, :, None, None] * (x - m[None, :, None, None])
                / jnp.sqrt(v[None, :, None, None] + eps)
                + be[None, :, None, None])

    blk = conv(x, p["w1"], p["b1"], 2, 1)
    blk = jax.nn.relu(bn(blk, *p["bn1"]))
    blk = conv(blk, p["w2"], p["b2"], 1, 0)
    blk = bn(blk, *p["bn2"])
    sc = conv(x, p["ws"], p["bs"], 2, 0)
    sc = bn(sc, *p["bns"])
    return jax.nn.relu(blk + sc)


def make_params(key, channels):
    C0, C1, C2 = channels
    ks = jax.random.split(key, 12)

    def bn_params(k, c):
        k0, k1, k2, k3 = jax.random.split(k, 4)
        gamma = jax.random.uniform(k0, (c,), jnp.float32, 0.5, 1.5)
        beta = jax.random.normal(k1, (c,), jnp.float32) * 0.1
        mean = jax.random.normal(k2, (c,), jnp.float32) * 0.1
        var = jax.random.uniform(k3, (c,), jnp.float32, 0.5, 1.5)
        return (gamma, beta, mean, var)

    return {
        "w1": jax.random.normal(ks[0], (C1, C0, 3, 3), jnp.float32) * 0.1,
        "b1": jax.random.normal(ks[1], (C1,), jnp.float32) * 0.1,
        "bn1": bn_params(ks[2], C1),
        "w2": jax.random.normal(ks[3], (C2, C1, 1, 1), jnp.float32) * 0.1,
        "b2": jax.random.normal(ks[4], (C2,), jnp.float32) * 0.1,
        "bn2": bn_params(ks[5], C2),
        "ws": jax.random.normal(ks[6], (C2, C0, 1, 1), jnp.float32) * 0.1,
        "bs": jax.random.normal(ks[7], (C2,), jnp.float32) * 0.1,
        "bns": bn_params(ks[8], C2),
    }


if __name__ == "__main__":
    key = jax.random.PRNGKey(0)
    k_x, k_p = jax.random.split(key)

    channels = (4, 8, 16)          # (in, mid, out) as in ResBlock(channels)
    x = jax.random.normal(k_x, (2, channels[0], 16, 16), jnp.float32)  # NCHW
    params = make_params(k_p, channels)

    out = resblock_forward(x, params)
    out = jax.block_until_ready(out)

    ref = ref_forward(x, params)
    # GEMM operands are bf16 (fp32 accumulation), so compare against the fp32
    # reference with a bf16-appropriate tolerance.
    np.testing.assert_allclose(np.asarray(out), np.asarray(ref),
                               rtol=5e-2, atol=5e-2)
    print("KERNEL_OK")
</pallas_src>

<mosaic_0001>
module attributes {stable_mosaic.version = 11 : i64} {
  func.func @resblock_kernel(%arg0: i32, %arg1: memref<128x36xbf16, #tpu.memory_space<vmem>>, %arg2: memref<36x128xbf16, #tpu.memory_space<vmem>>, %arg3: memref<1x128xf32, #tpu.memory_space<vmem>>, %arg4: memref<128x128xbf16, #tpu.memory_space<vmem>>, %arg5: memref<4x128xbf16, #tpu.memory_space<vmem>>, %arg6: memref<1x128xf32, #tpu.memory_space<vmem>>, %arg7: memref<128x128xf32, #tpu.memory_space<vmem>>) attributes {dimension_semantics = [#tpu.dimension_semantics<parallel>], iteration_bounds = array<i64: 1>, scalar_prefetch = 0 : i64, scratch_operands = 0 : i64, tpu.core_type = #tpu.core_type<tc>, window_params = [{transform_indices = @transform_0, window_bounds = array<i64: 128, 36>}, {pipeline_mode = #tpu.pipeline_mode<synchronous>, transform_indices = @transform_1, window_bounds = array<i64: 36, 128>}, {pipeline_mode = #tpu.pipeline_mode<synchronous>, transform_indices = @transform_2, window_bounds = array<i64: 1, 128>}, {pipeline_mode = #tpu.pipeline_mode<synchronous>, transform_indices = @transform_3, window_bounds = array<i64: 128, 128>}, {pipeline_mode = #tpu.pipeline_mode<synchronous>, transform_indices = @transform_4, window_bounds = array<i64: 4, 128>}, {pipeline_mode = #tpu.pipeline_mode<synchronous>, transform_indices = @transform_5, window_bounds = array<i64: 1, 128>}, {transform_indices = @transform_6, window_bounds = array<i64: 128, 128>}]} {
    %c0 = arith.constant 0 : index
    %c0_0 = arith.constant 0 : index
    %0 = vector.load %arg1[%c0, %c0_0] : memref<128x36xbf16, #tpu.memory_space<vmem>>, vector<128x36xbf16>
    %c0_1 = arith.constant 0 : index
    %c0_2 = arith.constant 0 : index
    %1 = vector.load %arg2[%c0_1, %c0_2] : memref<36x128xbf16, #tpu.memory_space<vmem>>, vector<36x128xbf16>
    %cst = arith.constant dense<0.000000e+00> : vector<128x128xf32>
    %2 = tpu.matmul %0, %1, %cst {dimension_numbers = #tpu.dot_dimension_numbers<[1], [0], [0], [1], [0, 0, 1, 1], [], []>} : vector<128x36xbf16>, vector<36x128xbf16>, vector<128x128xf32> -> vector<128x128xf32>
    %c0_3 = arith.constant 0 : index
    %c0_4 = arith.constant 0 : index
    %3 = vector.load %arg3[%c0_3, %c0_4] : memref<1x128xf32, #tpu.memory_space<vmem>>, vector<1x128xf32>
    %4 = vector.broadcast %3 : vector<1x128xf32> to vector<128x128xf32>
    %5 = arith.addf %2, %4 : vector<128x128xf32>
    %cst_5 = arith.constant 0.000000e+00 : f32
    %6 = vector.broadcast %cst_5 : f32 to vector<128x128xf32>
    %7 = arith.maximumf %5, %6 : vector<128x128xf32>
    %8 = arith.truncf %7 : vector<128x128xf32> to vector<128x128xbf16>
    %c0_6 = arith.constant 0 : index
    %c0_7 = arith.constant 0 : index
    %9 = vector.load %arg4[%c0_6, %c0_7] : memref<128x128xbf16, #tpu.memory_space<vmem>>, vector<128x128xbf16>
    %cst_8 = arith.constant dense<0.000000e+00> : vector<128x128xf32>
    %10 = tpu.matmul %8, %9, %cst_8 {dimension_numbers = #tpu.dot_dimension_numbers<[1], [0], [0], [1], [0, 0, 1, 1], [], []>} : vector<128x128xbf16>, vector<128x128xbf16>, vector<128x128xf32> -> vector<128x128xf32>
    %11 = vector.extract_strided_slice %0 {offsets = [0, 0], sizes = [128, 4], strides = [1, 1]} : vector<128x36xbf16> to vector<128x4xbf16>
    %c0_9 = arith.constant 0 : index
    %c0_10 = arith.constant 0 : index
    %12 = vector.load %arg5[%c0_9, %c0_10] : memref<4x128xbf16, #tpu.memory_space<vmem>>, vector<4x128xbf16>
    %cst_11 = arith.constant dense<0.000000e+00> : vector<128x128xf32>
    %13 = tpu.matmul %11, %12, %cst_11 {dimension_numbers = #tpu.dot_dimension_numbers<[1], [0], [0], [1], [0, 0, 1, 1], [], []>} : vector<128x4xbf16>, vector<4x128xbf16>, vector<128x128xf32> -> vector<128x128xf32>
    %14 = arith.addf %10, %13 : vector<128x128xf32>
    %c0_12 = arith.constant 0 : index
    %c0_13 = arith.constant 0 : index
    %15 = vector.load %arg6[%c0_12, %c0_13] : memref<1x128xf32, #tpu.memory_space<vmem>>, vector<1x128xf32>
    %16 = vector.broadcast %15 : vector<1x128xf32> to vector<128x128xf32>
    %17 = arith.addf %14, %16 : vector<128x128xf32>
    %cst_14 = arith.constant 0.000000e+00 : f32
    %18 = vector.broadcast %cst_14 : f32 to vector<128x128xf32>
    %19 = arith.maximumf %17, %18 : vector<128x128xf32>
    %c0_15 = arith.constant 0 : index
    %c0_16 = arith.constant 0 : index
    %20 = vector.load %arg7[%c0_15, %c0_16] : memref<128x128xf32, #tpu.memory_space<vmem>>, vector<128x128xf32>
    tpu.vector_store %arg7[%c0_15, %c0_16], %19 {strides = array<i32>} : memref<128x128xf32, #tpu.memory_space<vmem>>, vector<128x128xf32>,
    return
  }
  func.func @transform_0(%arg0: i32) -> (i32, i32) {
    %c0_i32 = arith.constant 0 : i32
    %c0_i32_0 = arith.constant 0 : i32
    return %arg0, %c0_i32 : i32, i32
  }
  func.func @transform_1(%arg0: i32) -> (i32, i32) {
    %c0_i32 = arith.constant 0 : i32
    %c0_i32_0 = arith.constant 0 : i32
    %c0_i32_1 = arith.constant 0 : i32
    return %c0_i32, %c0_i32_0 : i32, i32
  }
  func.func @transform_2(%arg0: i32) -> (i32, i32) {
    %c0_i32 = arith.constant 0 : i32
    %c0_i32_0 = arith.constant 0 : i32
    %c0_i32_1 = arith.constant 0 : i32
    return %c0_i32, %c0_i32_0 : i32, i32
  }
  func.func @transform_3(%arg0: i32) -> (i32, i32) {
    %c0_i32 = arith.constant 0 : i32
    %c0_i32_0 = arith.constant 0 : i32
    %c0_i32_1 = arith.constant 0 : i32
    return %c0_i32, %c0_i32_0 : i32, i32
  }
  func.func @transform_4(%arg0: i32) -> (i32, i32) {
    %c0_i32 = arith.constant 0 : i32
    %c0_i32_0 = arith.constant 0 : i32
    %c0_i32_1 = arith.constant 0 : i32
    return %c0_i32, %c0_i32_0 : i32, i32
  }
  func.func @transform_5(%arg0: i32) -> (i32, i32) {
    %c0_i32 = arith.constant 0 : i32
    %c0_i32_0 = arith.constant 0 : i32
    %c0_i32_1 = arith.constant 0 : i32
    return %c0_i32, %c0_i32_0 : i32, i32
  }
  func.func @transform_6(%arg0: i32) -> (i32, i32) {
    %c0_i32 = arith.constant 0 : i32
    %c0_i32_0 = arith.constant 0 : i32
    return %arg0, %c0_i32 : i32, i32
  }
}

</mosaic_0001>

<bundles_post_ra>
// kernel: resblock_forward.1
= control target key start
LH: loop header
LB: loop body
LE: loop exit
PB: predicated region body
PF: predicated region fallthrough
CT: control target
= control target key end

     0   :  { %vm133_vm0 = vcmask 1041408   ;;  %vm108_vm1 = vcmask 293888   ;;  %vm275_vm2 = vcmask 31744   ;;  %s972_s0 = inlined_call_operand.vmem [shape: bf16[128,36], index: 0, kind: input, shape index: {}]   ;;  %s973_s1 = inlined_call_operand.vmem [shape: bf16[36,128], index: 1, kind: input, shape index: {}]   ;;  %s974_s2 = inlined_call_operand.vmem [shape: f32[1,128], index: 2, kind: input, shape index: {}]   ;;  %s975_s3 = inlined_call_operand.vmem [shape: bf16[128,128], index: 3, kind: input, shape index: {}]   ;;  %s976_s4 = inlined_call_operand.vmem [shape: bf16[4,128], index: 4, kind: input, shape index: {}]   ;;  %s977_s5 = inlined_call_operand.vmem [shape: f32[1,128], index: 5, kind: input, shape index: {}]   ;;  %s978_s6 = inlined_call_operand.hbm [shape: f32[128,128], index: 6, kind: output, shape index: {}]  }
   0x1   :  { %v774_v0 = vld [vmem:[%s973_s1 + $0x10] ss:$0 sps:$4 sm:$0x33]   ;;  %v775_v1 = vld [vmem:[%s973_s1 + $0x8] sm:$0xff]   ;;  %v777_v3 = vld [vmem:[%s972_s0] sm:$0xff]  }
   0x2   :  { %769 = vmatprep.subr.msk.bf16.mxu0 %vm133_vm0, %v774_v0  ;;  %v135_v2 = vsel %vm133_vm0, %v774_v0, 0  ;;  %v776_v4 = vld [vmem:[%s973_s1] sm:$0xff]   ;;  %687 = vmatprep.mubr.msk.bf16.mxu0 %vm108_vm1, %v777_v3  ;;  %v778_v5 = vld [vmem:[%s972_s0 + $0x8] sm:$0xff]   ;;  %v779_v6 = vld [vmem:[%s972_s0 + $0x10] sm:$0xff]  }
   0x3   :  { %682 = vmatpush3.bf16.msra.mxu0 %v135_v2  ;;  %705 = vmatprep.mubr.msk.bf16.mxu1 %vm275_vm2, %v777_v3  ;;  %v274_v7 = vld [vmem:[%s976_s4] sm:$0x3]  ;;  %v785_v9 = vld [vmem:[%s975_s3 + $0x38] sm:$0xff]   ;;  %v786_v10 = vld [vmem:[%s975_s3 + $0x30] sm:$0xff]  }
   0x4   :  { %683 = vmatprep.subr.bf16.mxu0 %v775_v1  ;;  %770 = vmatprep.subr.msk.bf16.mxu1 %vm133_vm0, %v274_v7  ;;  %v293_v8 = vsel %vm133_vm0, %v274_v7, 0  ;;  %v787_v11 = vld [vmem:[%s975_s3 + $0x28] sm:$0xff]   ;;  %v780_v12 = vld [vmem:[%s972_s0 + $0x18] sm:$0xff]  }
   0x5   :  { %704 = vmatpush3.bf16.msra.mxu1 %v293_v8 }
   0x6   :  { %753 = vmatprep.subr.bf16.mxu1 %v785_v9 }
   0x7   :  { %684 = vmatpush3.bf16.msra.mxu0 %v775_v1 }
   0x8   :  { %685 = vmatprep.subr.bf16.mxu0 %v776_v4  ;;  %706 = vmatmul.mubr.msk.bf16.vlgmr.msra.gmra.mxu1 %vm275_vm2, %v778_v5 }
   0x9   :  { %709 = vmatprep.mubr.msk.bf16.mxu1 %vm275_vm2, %v779_v6  ;;  %761 = vmatpush3.bf16.msra.mxu1 %v785_v9 }
   0xb   :  { %686 = vmatpush3.bf16.msra.mxu0 %v776_v4 }
   0xc   :  { %721 = vmatprep.subr.bf16.mxu0 %v785_v9 }
   0xe   :  { %688 = vmatmul.mubr.msk.bf16.vlgmr.msra.gmra.mxu0 %vm108_vm1, %v778_v5 }
   0xf   :  { %691 = vmatprep.mubr.msk.bf16.mxu0 %vm108_vm1, %v779_v6  ;;  %722 = vmatpush3.bf16.msra.mxu0 %v785_v9 }
  0x10   :  { %723 = vmatprep.subr.bf16.mxu0 %v786_v10 }
  0x11   :  { %11 = vsyncpa [#allocation3], 0  ;;  %v781_v13 = vld [vmem:[%s972_s0 + $0x20] sm:$0xff]   ;;  %754 = vmatprep.subr.bf16.mxu1 %v786_v10  ;;  %710 = vmatmul.mubr.msk.bf16.gmra.mxu1 %vm275_vm2, %v780_v12  ;;  %v789_v15 = vld [vmem:[%s975_s3 + $0x18] sm:$0xff]  }
  0x12   :  { %v788_v14 = vld [vmem:[%s975_s3 + $0x20] sm:$0xff]   ;;  %762 = vmatpush3.bf16.msra.mxu1 %v786_v10  ;;  %713 = vmatprep.mubr.msk.bf16.mxu1 %vm275_vm2, %v781_v13  ;;  %v782_v16 = vld [vmem:[%s972_s0 + $0x28] sm:$0xff]   ;;  %v783_v17 = vld [vmem:[%s972_s0 + $0x30] sm:$0xff]  }
  0x13   :  { %724 = vmatpush3.bf16.msra.mxu0 %v786_v10  ;;  %755 = vmatprep.subr.bf16.mxu1 %v787_v11  ;;  %v784_v18 = vld [vmem:[%s972_s0 + $0x38] sm:$0xff]   ;;  %v790_v19 = vld [vmem:[%s975_s3 + $0x10] sm:$0xff]   ;;  %v791_v20 = vld [vmem:[%s975_s3 + $0x8] sm:$0xff]  }
  0x14   :  { %725 = vmatprep.subr.bf16.mxu0 %v787_v11  ;;  %v792_v21 = vld [vmem:[%s975_s3] sm:$0xff]  }
  0x15   :  { %v608_v24 = vld [vmem:[%s974_s2] ss:$0 sm:$0xff] }
  0x16   :  { %692 = vmatmul.mubr.msk.bf16.gmra.mxu0 %vm108_vm1, %v780_v12  ;;  %763 = vmatpush3.bf16.msra.mxu1 %v787_v11 }
  0x17   :  { %695 = vmatprep.mubr.msk.bf16.mxu0 %vm108_vm1, %v781_v13  ;;  %726 = vmatpush3.bf16.msra.mxu0 %v787_v11 }
  0x18   :  { %727 = vmatprep.subr.bf16.mxu0 %v788_v14  ;;  %756 = vmatprep.subr.bf16.mxu1 %v788_v14 }
  0x19   :  { %714 = vmatmul.mubr.msk.bf16.gmra.mxu1 %vm275_vm2, %v782_v16 }
  0x1a   :  { %764 = vmatpush3.bf16.msra.mxu1 %v788_v14  ;;  %717 = vmatprep.mubr.msk.bf16.mxu1 %vm275_vm2, %v783_v17 }
  0x1b   :  { %728 = vmatpush3.bf16.msra.mxu0 %v788_v14  ;;  %757 = vmatprep.subr.bf16.mxu1 %v789_v15 }
  0x1c   :  { %729 = vmatprep.subr.bf16.mxu0 %v789_v15 }
  0x1e   :  { %696 = vmatmul.mubr.msk.bf16.gmra.mxu0 %vm108_vm1, %v782_v16  ;;  %765 = vmatpush3.bf16.msra.mxu1 %v789_v15 }
  0x1f   :  { %699 = vmatprep.mubr.msk.bf16.mxu0 %vm108_vm1, %v783_v17  ;;  %730 = vmatpush3.bf16.msra.mxu0 %v789_v15 }
  0x20   :  { %731 = vmatprep.subr.bf16.mxu0 %v790_v19  ;;  %758 = vmatprep.subr.bf16.mxu1 %v790_v19 }
  0x21   :  { %718 = vmatmul.mubr.msk.bf16.gmra.mxu1 %vm275_vm2, %v784_v18 }
  0x22   :  { %766 = vmatpush3.bf16.msra.mxu1 %v790_v19 }
  0x23   :  { %732 = vmatpush3.bf16.msra.mxu0 %v790_v19  ;;  %759 = vmatprep.subr.bf16.mxu1 %v791_v20 }
  0x24   :  { %733 = vmatprep.subr.bf16.mxu0 %v791_v20 }
  0x26   :  { %700 = vmatmul.mubr.msk.bf16.gmra.mxu0 %vm108_vm1, %v784_v18  ;;  %767 = vmatpush3.bf16.msra.mxu1 %v791_v20 }
  0x27   :  { %734 = vmatpush3.bf16.msra.mxu0 %v791_v20  ;;  %760 = vmatprep.subr.bf16.mxu1 %v792_v21 }
  0x28   :  { %735 = vmatprep.subr.bf16.mxu0 %v792_v21 }
  0x2a   :  { %768 = vmatpush3.bf16.msra.mxu1 %v792_v21 }
  0x2b   :  { %736 = vmatpush3.bf16.msra.mxu0 %v792_v21 }
  0xc8   :  { %v707_v15 = vpop.f32.mrf.mxu1 }
  0xca   :  { %v329_v16 = vpop.f32.mrf.mxu1 }
  0xcc   :  { %v708_v17 = vpop.f32.mrf.mxu1 }
  0xce   :  { %v689_v22 = vpop.f32.mrf.mxu0  ;;  %v332_v18 = vpop.f32.mrf.mxu1 }
  0xcf   :  { %v180_v28 = vadd.f32 %v689_v22, %v608_v24 }
  0xd0   :  { %v171_v23 = vpop.f32.mrf.mxu0 }
  0xd1   :  { %v172_v26 = vadd.f32 %v608_v24, %v171_v23  ;;  %v236_v35 = vmax.f32 %v180_v28, 0.0  ;;  %v711_v19 = vpop.f32.mrf.mxu1 }
  0xd2   :  { %v690_v25 = vpop.f32.mrf.mxu0 }
  0xd3   :  { %v183_v27 = vadd.f32 %v690_v25, %v608_v24  ;;  %v234_v33 = vmax.f32 %v172_v26, 0.0  ;;  %v345_v20 = vpop.f32.mrf.mxu1 }
  0xd4   :  { %v174_v29 = vpop.f32.mrf.mxu0 }
  0xd5   :  { %v175_v30 = vadd.f32 %v608_v24, %v174_v29  ;;  %v237_v31 = vmax.f32 %v183_v27, 0.0  ;;  %v712_v21 = vpop.f32.mrf.mxu1 }
  0xd6   :  { %v693_v32 = vpop.f32.mrf.mxu0 }
  0xd7   :  { %v235_v34 = vmax.f32 %v175_v30, 0.0  ;;  %v251_v38 = vpack.c.bf16 %v237_v31, %v236_v35  ;;  %v196_v42 = vadd.f32 %v693_v32, %v608_v24  ;;  %v348_v22 = vpop.f32.mrf.mxu1  ;;  %v943_v30 = vld [vmem:[%s977_s5] ss:$0 sm:$0xff]  ;;  %s815_s5 = smov [#allocation2]  }
  0xd8   :  { %v187_v36 = vpop.f32.mrf.mxu0  ;;  %s597_s11 = sshll.u32 %s815_s5, 4  ;;  %s598_s11 = int_to_ptr.vmem [resolvable:$true] %s597_s11 }
  0xd9   :  { %v250_v37 = vpack.c.bf16 %v235_v34, %v234_v33  ;;  %v188_v40 = vadd.f32 %v608_v24, %v187_v36  ;;  %v240_v49 = vmax.f32 %v196_v42, 0.0  ;;  %v715_v23 = vpop.f32.mrf.mxu1  ;;  %s793_s12 = scalar_lea.vmem %s598_s11, 2048  ;;  %p798_p1 = scmp.lt.s32.totalorder %s598_s11, %s598_s11 }
  0xda   :  { %v694_v39 = vpop.f32.mrf.mxu0  ;;  %p794_p0 = scmp.ne.s32.totalorder %s598_s11, %s793_s12  ;;  %p799_p2 = scmp.lt.s32.totalorder %s793_s12, %s793_s12 }
  0xdb   :  { %v199_v41 = vadd.f32 %v694_v39, %v608_v24  ;;  %737 = vmatprep.mubr.bf16.mxu0 %v250_v37  ;;  %v238_v47 = vmax.f32 %v188_v40, 0.0  ;;  %v361_v25 = vpop.f32.mrf.mxu1 }
  0xdc   :  { %v190_v43 = vpop.f32.mrf.mxu0  ;;  %738 = vmatmul.mubr.bf16.vlgmr.msra.gmra.mxu0 %v251_v38  ;;  %p800_p3 = por %p799_p2, %p798_p1 }
  0xdd   :  { %v191_v44 = vadd.f32 %v608_v24, %v190_v43  ;;  %v241_v45 = vmax.f32 %v199_v41, 0.0  ;;  %v716_v26 = vpop.f32.mrf.mxu1 }
  0xde   :  { %v697_v46 = vpop.f32.mrf.mxu0  ;;  %p801_p4 = pnand %p800_p3, %p794_p0 }
  0xdf   :  { %v239_v48 = vmax.f32 %v191_v44, 0.0  ;;  %v253_v52 = vpack.c.bf16 %v241_v45, %v240_v49  ;;  %v212_v56 = vadd.f32 %v697_v46, %v608_v24 }
  0xe0   :  { %v203_v50 = vpop.f32.mrf.mxu0 }
  0xe1   :  { %v252_v51 = vpack.c.bf16 %v239_v48, %v238_v47  ;;  %v204_v54 = vadd.f32 %v608_v24, %v203_v50  ;;  %v244_v63 = vmax.f32 %v212_v56, 0.0 }
  0xe2   :  { %v698_v53 = vpop.f32.mrf.mxu0 }
  0xe3   :  { %v215_v55 = vadd.f32 %v698_v53, %v608_v24  ;;  %741 = vmatprep.mubr.bf16.mxu1 %v252_v51  ;;  %v242_v61 = vmax.f32 %v204_v54, 0.0 }
  0xe4   :  { %v206_v57 = vpop.f32.mrf.mxu0  ;;  %742 = vmatmul.mubr.bf16.vlgmr.msra.gmra.mxu1 %v253_v52 }
  0xe5   :  { %v207_v58 = vadd.f32 %v608_v24, %v206_v57  ;;  %v245_v59 = vmax.f32 %v215_v55, 0.0 }
  0xe6   :  { %v701_v60 = vpop.f32.mrf.mxu0 }
  0xe7   :  { %v243_v62 = vmax.f32 %v207_v58, 0.0  ;;  %v255_v2 = vpack.c.bf16 %v245_v59, %v244_v63  ;;  %v228_v6 = vadd.f32 %v701_v60, %v608_v24 }
  0xe8   :  { %v219_v0 = vpop.f32.mrf.mxu0 }
  0xe9   :  { %v254_v1 = vpack.c.bf16 %v243_v62, %v242_v61  ;;  %v220_v4 = vadd.f32 %v608_v24, %v219_v0  ;;  %v248_v12 = vmax.f32 %v228_v6, 0.0 }
  0xea   :  { %v702_v3 = vpop.f32.mrf.mxu0 }
  0xeb   :  { %v231_v5 = vadd.f32 %v702_v3, %v608_v24  ;;  %745 = vmatprep.mubr.bf16.mxu1 %v254_v1  ;;  %v246_v10 = vmax.f32 %v220_v4, 0.0 }
  0xec   :  { %v222_v7 = vpop.f32.mrf.mxu0  ;;  %746 = vmatmul.mubr.bf16.gmra.mxu1 %v255_v2 }
  0xed   :  { %v223_v8 = vadd.f32 %v608_v24, %v222_v7  ;;  %v249_v9 = vmax.f32 %v231_v5, 0.0  ;;  %v364_v24 = vpop.f32.mrf.mxu1 }
  0xef   :  { %v247_v11 = vmax.f32 %v223_v8, 0.0  ;;  %v257_v14 = vpack.c.bf16 %v249_v9, %v248_v12  ;;  %v936_v27 = vpop.f32.mrf.mxu1 }
  0xf1   :  { %v256_v13 = vpack.c.bf16 %v247_v11, %v246_v10  ;;  %v938_v28 = vpop.f32.mrf.mxu1 }
  0xf3   :  { %749 = vmatprep.mubr.bf16.mxu1 %v256_v13  ;;  %v945_v32 = vpop.f32.mrf.mxu1 }
  0xf4   :  { %750 = vmatmul.mubr.bf16.gmra.mxu1 %v257_v14 }
  0xf5   :  { %v949_v40 = vpop.f32.mrf.mxu1 }
 0x19c   :  { %v739_v29 = vpop.f32.mrf.mxu0 }
 0x19d   :  { %v483_v31 = vadd.f32 %v739_v29, %v707_v15 }
 0x19e   :  { %v474_v33 = vpop.f32.mrf.mxu0 }
 0x19f   :  { %v546_v34 = vadd.f32 %v943_v30, %v483_v31  ;;  %v475_v35 = vadd.f32 %v474_v33, %v329_v16 }
 0x1a0   :  { %v740_v36 = vpop.f32.mrf.mxu0 }
 0x1a1   :  { %v562_v37 = vmax.f32 %v546_v34, 0.0  ;;  %v544_v38 = vadd.f32 %v943_v30, %v475_v35  ;;  %v486_v39 = vadd.f32 %v740_v36, %v708_v17 }
 0x1a2   :  { %v477_v41 = vpop.f32.mrf.mxu0 }
 0x1a3   :  { %578 = vst [vmem:[#allocation2 + $0x10] sm:$0xff] %v562_v37  ;;  %v560_v42 = vmax.f32 %v544_v38, 0.0  ;;  %v547_v43 = vadd.f32 %v943_v30, %v486_v39  ;;  %v478_v44 = vadd.f32 %v477_v41, %v332_v18 }
 0x1a4   :  { %v743_v45 = vpop.f32.mrf.mxu1 }
 0x1a5   :  { %576 = vst [vmem:[#allocation2] sm:$0xff] %v560_v42  ;;  %v563_v46 = vmax.f32 %v547_v43, 0.0  ;;  %v545_v47 = vadd.f32 %v943_v30, %v478_v44  ;;  %v499_v48 = vadd.f32 %v743_v45, %v711_v19 }
 0x1a6   :  { %v490_v49 = vpop.f32.mrf.mxu1 }
 0x1a7   :  { %579 = vst [vmem:[#allocation2 + $0x18] sm:$0xff] %v563_v46  ;;  %v561_v50 = vmax.f32 %v545_v47, 0.0  ;;  %v550_v51 = vadd.f32 %v943_v30, %v499_v48  ;;  %v491_v52 = vadd.f32 %v490_v49, %v345_v20 }
 0x1a8   :  { %v744_v53 = vpop.f32.mrf.mxu1 }
 0x1a9   :  { %577 = vst [vmem:[#allocation2 + $0x8] sm:$0xff] %v561_v50  ;;  %v566_v54 = vmax.f32 %v550_v51, 0.0  ;;  %v548_v55 = vadd.f32 %v943_v30, %v491_v52  ;;  %v502_v56 = vadd.f32 %v744_v53, %v712_v21 }
 0x1aa   :  { %v493_v57 = vpop.f32.mrf.mxu1 }
 0x1ab   :  { %582 = vst [vmem:[#allocation2 + $0x30] sm:$0xff] %v566_v54  ;;  %v564_v58 = vmax.f32 %v548_v55, 0.0  ;;  %v551_v59 = vadd.f32 %v943_v30, %v502_v56  ;;  %v494_v60 = vadd.f32 %v493_v57, %v348_v22 }
 0x1ac   :  { %v747_v61 = vpop.f32.mrf.mxu1 }
 0x1ad   :  { %580 = vst [vmem:[#allocation2 + $0x20] sm:$0xff] %v564_v58  ;;  %v567_v62 = vmax.f32 %v551_v59, 0.0  ;;  %v549_v63 = vadd.f32 %v943_v30, %v494_v60  ;;  %v515_v0 = vadd.f32 %v747_v61, %v715_v23 }
 0x1ae   :  { %v506_v1 = vpop.f32.mrf.mxu1 }
 0x1af   :  { %583 = vst [vmem:[#allocation2 + $0x38] sm:$0xff] %v567_v62  ;;  %v565_v2 = vmax.f32 %v549_v63, 0.0  ;;  %v554_v3 = vadd.f32 %v943_v30, %v515_v0  ;;  %v507_v4 = vadd.f32 %v506_v1, %v361_v25 }
 0x1b0   :  { %v748_v5 = vpop.f32.mrf.mxu1 }
 0x1b1   :  { %581 = vst [vmem:[#allocation2 + $0x28] sm:$0xff] %v565_v2  ;;  %v570_v6 = vmax.f32 %v554_v3, 0.0  ;;  %v552_v7 = vadd.f32 %v943_v30, %v507_v4  ;;  %v518_v8 = vadd.f32 %v748_v5, %v716_v26 }
 0x1b2   :  { %v509_v9 = vpop.f32.mrf.mxu1 }
 0x1b3   :  { %586 = vst [vmem:[#allocation2 + $0x50] sm:$0xff] %v570_v6  ;;  %v568_v10 = vmax.f32 %v552_v7, 0.0  ;;  %v555_v11 = vadd.f32 %v943_v30, %v518_v8  ;;  %v510_v12 = vadd.f32 %v509_v9, %v364_v24 }
 0x1b4   :  { %v751_v13 = vpop.f32.mrf.mxu1 }
 0x1b5   :  { %584 = vst [vmem:[#allocation2 + $0x40] sm:$0xff] %v568_v10  ;;  %v571_v14 = vmax.f32 %v555_v11, 0.0  ;;  %v553_v15 = vadd.f32 %v943_v30, %v510_v12  ;;  %v531_v16 = vadd.f32 %v751_v13, %v936_v27 }
 0x1b6   :  { %v522_v17 = vpop.f32.mrf.mxu1 }
 0x1b7   :  { %587 = vst [vmem:[#allocation2 + $0x58] sm:$0xff] %v571_v14  ;;  %v569_v18 = vmax.f32 %v553_v15, 0.0  ;;  %v558_v19 = vadd.f32 %v943_v30, %v531_v16  ;;  %v523_v20 = vadd.f32 %v522_v17, %v938_v28 }
 0x1b8   :  { %v752_v21 = vpop.f32.mrf.mxu1 }
 0x1b9   :  { %585 = vst [vmem:[#allocation2 + $0x48] sm:$0xff] %v569_v18  ;;  %v574_v22 = vmax.f32 %v558_v19, 0.0  ;;  %v556_v23 = vadd.f32 %v943_v30, %v523_v20  ;;  %v534_v25 = vadd.f32 %v752_v21, %v945_v32 }
 0x1ba   :  { %v525_v26 = vpop.f32.mrf.mxu1 }
 0x1bb   :  { %590 = vst [vmem:[#allocation2 + $0x70] sm:$0xff] %v574_v22  ;;  %v572_v24 = vmax.f32 %v556_v23, 0.0  ;;  %v559_v29 = vadd.f32 %v943_v30, %v534_v25  ;;  %v526_v27 = vadd.f32 %v525_v26, %v949_v40 }
 0x1bd   :  { %588 = vst [vmem:[#allocation2 + $0x60] sm:$0xff] %v572_v24  ;;  %v575_v31 = vmax.f32 %v559_v29, 0.0  ;;  %v557_v28 = vadd.f32 %v943_v30, %v526_v27 }
 0x1bf   :  { %591 = vst [vmem:[#allocation2 + $0x78] sm:$0xff] %v575_v31  ;;  %v573_v33 = vmax.f32 %v557_v28, 0.0 }
 0x1c1   :  { %589 = vst [vmem:[#allocation2 + $0x68] sm:$0xff] %v573_v33 }
 0x1c2   :  { %804 = shalt.err (!%p801_p4)
}
 0x1c3   :  { %s816_s13 = smov 128   ;;  %s817_s4 = smov 8  }
 0x1c4   :  { %603 = dma.vmem_to_hbm [thread:$0]  %s598_s11, 2048, %s978_s6, [#allocation3], %s816_s13, %s816_s13, %s817_s4  }
 0x1c5   :  { %813 = dma.done.wait [#allocation3], 2048  }
 0x1c6   :  { %814 = vsyncadd [#allocation3], 4294965248 }
 0x1c7   :  { %607 = vsyncpa [#allocation3], 1 }

</bundles_post_ra>
